<compile_context>
chip_gen: v7x
topology: tpu7x:2x2x1
jax: 0.10.0
libtpu: 0.0.40
codegen_flags: <defaults>
</compile_context>

<pallas_src>
import functools

import jax
import jax.numpy as jnp
from jax.experimental import pallas as pl
from jax.experimental.pallas import tpu as pltpu


# ----------------------------------------------------------------------------
# Fused Pallas kernel
# ----------------------------------------------------------------------------
def _upsampling_fused_kernel(
    x_ref,        # (nb*Hin,  Win*Cin)              bf16  low-res input rows (batch folded)
    sc_ref,       # (nb*Hout, Wout*Csc)             bf16  skip-connection rows
    whb_ref,      # (nb*(Hout+2), nb*Hin)           bf16  block-diag row-padded H-interp
    wkr_ref,      # (Win*Cin, Wout*Cin)             bf16  kron(Ww, I_Cin): W-interp on slabs
    bw1_ref,      # (3, Wout*(Cin+Csc), Wout*Cmid)  bf16  banded conv1 (concat folded in)
    bw2_ref,      # (3, Wout*Cmid, Wout*Cout)       bf16  banded conv2
    s1_ref, t1_ref,   # (1, Wout*Cmid) f32  folded BN1 scale / bias (tiled across W)
    s2_ref, t2_ref,   # (1, Wout*Cout) f32  folded BN2 scale / bias
    o_ref,        # (nb*Hout, Wout*Cout)            f32
    *, nb,
):
    hout = o_ref.shape[0] // nb
    hp = hout + 2              # per-image padded rows (zero halo row top & bottom)
    mp = nb * hp               # total padded rows handled this grid step
    mo = mp - 2                # conv matmul M (last 2 shifted rows are never read)
    l_x = wkr_ref.shape[1]     # lane width of the upsampled-x half of the cat slab
    l_s = sc_ref.shape[1]      # lane width of the skip-connection half
    l_mid = bw1_ref.shape[2]
    f32, bf16 = jnp.float32, jnp.bfloat16

    # --- bilinear upsample: two bf16 MXU matmuls with f32 accumulation.
    #     whb's halo rows are all-zero, so xup already contains the vertical
    #     'same' zero padding for every image in the block. ---------------------
    t = jnp.dot(whb_ref[...], x_ref[...], preferred_element_type=f32)
    xup = jnp.dot(t.astype(bf16), wkr_ref[...], preferred_element_type=f32)   # (mp, l_x)

    # --- build the concatenated (x_up | short_cut) slab fully in registers:
    #     row-pad the skip connection with per-image zero halo rows, then one
    #     lane-concat.  No scratch zeroing, no staging stores. ------------------
    zs = jnp.zeros((1, l_s), bf16)
    scv = sc_ref[...]
    sc_pieces = []
    for b in range(nb):
        sc_pieces += [zs, scv[b * hout:(b + 1) * hout], zs]
    sc_pad = jnp.concatenate(sc_pieces, axis=0)                    # (mp, l_s)
    cat = jnp.concatenate([xup.astype(bf16), sc_pad], axis=1)      # (mp, l_x + l_s)

    # --- conv1 + BN + ReLU: 3 banded row-slab matmuls, K = l_x + l_s (=128) ----
    acc1 = jnp.zeros((mo, l_mid), f32)
    for ky in range(3):
        acc1 += jnp.dot(cat[ky:ky + mo], bw1_ref[ky], preferred_element_type=f32)
    y1 = jnp.maximum(acc1 * s1_ref[...] + t1_ref[...], 0.0).astype(bf16)

    # --- re-pad conv1 output per image (drops the 2 junk rows between images) --
    zm = jnp.zeros((1, l_mid), bf16)
    y1_pieces = []
    for b in range(nb):
        y1_pieces += [zm, y1[b * hp:b * hp + hout], zm]
    y1_pad = jnp.concatenate(y1_pieces, axis=0)                    # (mp, l_mid)

    # --- conv2 + BN + ReLU ------------------------------------------------------
    acc2 = jnp.zeros((mo, bw2_ref.shape[2]), f32)
    for ky in range(3):
        acc2 += jnp.dot(y1_pad[ky:ky + mo], bw2_ref[ky], preferred_element_type=f32)
    y2 = jnp.maximum(acc2 * s2_ref[...] + t2_ref[...], 0.0)

    # --- single lane-dense, unmasked output store -------------------------------
    o_ref[...] = jnp.concatenate(
        [y2[b * hp:b * hp + hout] for b in range(nb)], axis=0).astype(o_ref.dtype)


# ----------------------------------------------------------------------------
# Host-side helpers (tiny, run inside the jitted wrapper)
# ----------------------------------------------------------------------------
def _bilinear_matrix(in_size, out_size, align_corners):
    """(out_size, in_size) interpolation matrix matching F.interpolate bilinear.

    Matches PyTorch for UPSAMPLING only (src clipped to [0, in_size-1])."""
    out_idx = jnp.arange(out_size, dtype=jnp.float32)
    if align_corners and out_size > 1:
        src = out_idx * (in_size - 1) / max(out_size - 1, 1)
    else:
        src = (out_idx + 0.5) * (in_size / out_size) - 0.5
        src = jnp.clip(src, 0.0, float(in_size - 1))
    lo = jnp.floor(src).astype(jnp.int32)
    hi = jnp.minimum(lo + 1, in_size - 1)
    frac = src - lo.astype(jnp.float32)
    m = jnp.zeros((out_size, in_size), jnp.float32)
    m = m.at[jnp.arange(out_size), lo].add(1.0 - frac)
    m = m.at[jnp.arange(out_size), hi].add(frac)
    return m


def _banded_conv_weights(w, w_sp):
    """Express a 3x3 'same' conv as 3 banded row-slab matrices.

    w: (3, 3, C, Cout) HWIO weights. Returns B: (3, w_sp*C, w_sp*Cout) with
        y_slab[h] = sum_ky row_slab[h + ky - 1] @ B[ky],
    where row_slab[i] = x[i].reshape(w_sp*C) and rows outside [0, H) are zero.
    Horizontal zero padding is encoded by the band structure."""
    c, cout = w.shape[2], w.shape[3]
    kx = jnp.arange(3)
    s_idx = jnp.arange(w_sp)   # source pixel
    t_idx = jnp.arange(w_sp)   # destination pixel
    sel = (s_idx[None, :, None] == (t_idx[None, None, :] + kx[:, None, None] - 1))
    sel = sel.astype(w.dtype)                                   # (3, w_sp, w_sp)
    band = jnp.einsum("kst,ykco->yscto", sel, w)                # (3, w_sp, C, w_sp, Cout)
    return band.reshape(3, w_sp * c, w_sp * cout)


# ----------------------------------------------------------------------------
# Parameter construction (deterministic, synthetic) with BN folding (eval mode)
# ----------------------------------------------------------------------------
def _make_conv_bn_params(key, cin, cout, eps=1e-5):
    kw, kb, kg, kbt, km, kv = jax.random.split(key, 6)
    w = jax.random.normal(kw, (3, 3, cin, cout), jnp.float32) * 0.1   # HWIO
    conv_b = jax.random.normal(kb, (cout,), jnp.float32) * 0.1
    gamma = 1.0 + 0.1 * jax.random.normal(kg, (cout,), jnp.float32)
    beta = 0.1 * jax.random.normal(kbt, (cout,), jnp.float32)
    run_mean = 0.1 * jax.random.normal(km, (cout,), jnp.float32)
    run_var = jnp.abs(1.0 + 0.1 * jax.random.normal(kv, (cout,), jnp.float32))
    scale = gamma / jnp.sqrt(run_var + eps)
    bias = beta + scale * (conv_b - run_mean)
    return w, scale[None, :], bias[None, :]


def init_upsampling_params(key, in_channels, out_channels, multiplyer=2):
    k1, k2 = jax.random.split(key)
    w1, s1, b1 = _make_conv_bn_params(k1, in_channels * multiplyer, out_channels)
    w2, s2, b2 = _make_conv_bn_params(k2, out_channels, out_channels)
    return dict(w1=w1, s1=s1, b1=b1, w2=w2, s2=s2, b2=b2)


# ----------------------------------------------------------------------------
# Forward pass (use_deconv=False branch), fully fused into one pallas_call
# ----------------------------------------------------------------------------
@functools.partial(jax.jit, static_argnames=("align_corners", "batch_block"))
def upsampling_forward(params, x_nchw, short_cut_nchw, align_corners=False,
                       batch_block=None):
    n, cin, hin, win = x_nchw.shape
    n2, csc, hout, wout = short_cut_nchw.shape
    assert n2 == n
    # _bilinear_matrix matches PyTorch only for upsampling (out >= in).
    assert hout >= hin and wout >= win
    w1, w2 = params["w1"], params["w2"]
    assert w1.shape[2] == cin + csc
    cmid, cout = w1.shape[-1], w2.shape[-1]

    # Batch block per grid step.  Default: whole batch -> grid=(1,) (best on the
    # single-TC v5e/v6e).  On v7x use batch_block = n // 2 to feed both TCs.
    nb = n if batch_block is None else batch_block
    assert n % nb == 0
    hp = hout + 2

    # NCHW -> lane-dense row slabs with batch folded into the row axis (bf16 MXU
    # inputs).  No jnp.pad / concat / standalone upsample op in XLA: everything
    # else happens inside the kernel.
    x2d = jnp.transpose(x_nchw, (0, 2, 3, 1)).reshape(n * hin, win * cin)
    x2d = x2d.astype(jnp.bfloat16)
    sc2d = jnp.transpose(short_cut_nchw, (0, 2, 3, 1)).reshape(n * hout, wout * csc)
    sc2d = sc2d.astype(jnp.bfloat16)

    wh = _bilinear_matrix(hin, hout, align_corners)                      # (hout, hin)
    ww = _bilinear_matrix(win, wout, align_corners)                      # (wout, win)
    # Block-diagonal, row-padded H-interp: maps the nb*hin input rows of one grid
    # step to nb*(hout+2) padded output rows; per-image halo rows are all-zero
    # rows, so the upsample matmul emits the vertical 'same' padding for free.
    wh_big = jnp.zeros((nb * hp, nb * hin), jnp.float32)
    for b in range(nb):
        wh_big = wh_big.at[b * hp + 1:b * hp + 1 + hout,
                           b * hin:(b + 1) * hin].set(wh)
    wh_big = wh_big.astype(jnp.bfloat16)
    # kron(Ww, I_cin) so that slab @ wkr upsamples along W in row-slab layout.
    wkr = jnp.einsum("ow,cd->wcod", ww, jnp.eye(cin, dtype=jnp.float32))
    wkr = wkr.reshape(win * cin, wout * cin).astype(jnp.bfloat16)

    # Conv1: the channel concat is folded into the weights by stacking the x_up
    # half and the short_cut half along the contraction axis (K = wout*(cin+csc)).
    bw1 = jnp.concatenate(
        [_banded_conv_weights(w1[:, :, :cin, :], wout),
         _banded_conv_weights(w1[:, :, cin:, :], wout)], axis=1).astype(jnp.bfloat16)
    bw2 = _banded_conv_weights(w2, wout).astype(jnp.bfloat16)

    # Folded BN scale/bias tiled across W so they broadcast over the slab layout.
    s1 = jnp.tile(params["s1"], (1, wout))
    t1 = jnp.tile(params["b1"], (1, wout))
    s2 = jnp.tile(params["s2"], (1, wout))
    t2 = jnp.tile(params["b2"], (1, wout))

    kern = functools.partial(_upsampling_fused_kernel, nb=nb)
    out2d = pl.pallas_call(
        kern,
        out_shape=jax.ShapeDtypeStruct((n * hout, wout * cout), jnp.float32),
        grid_spec=pltpu.PrefetchScalarGridSpec(
            num_scalar_prefetch=0,
            grid=(n // nb,),
            in_specs=[
                pl.BlockSpec((nb * hin, win * cin), lambda i: (i, 0)),
                pl.BlockSpec((nb * hout, wout * csc), lambda i: (i, 0)),
                pl.BlockSpec((nb * hp, nb * hin), lambda i: (0, 0)),
                pl.BlockSpec((win * cin, wout * cin), lambda i: (0, 0)),
                pl.BlockSpec((3, wout * (cin + csc), wout * cmid), lambda i: (0, 0, 0)),
                pl.BlockSpec((3, wout * cmid, wout * cout), lambda i: (0, 0, 0)),
                pl.BlockSpec((1, wout * cmid), lambda i: (0, 0)),
                pl.BlockSpec((1, wout * cmid), lambda i: (0, 0)),
                pl.BlockSpec((1, wout * cout), lambda i: (0, 0)),
                pl.BlockSpec((1, wout * cout), lambda i: (0, 0)),
            ],
            out_specs=pl.BlockSpec((nb * hout, wout * cout), lambda i: (i, 0)),
        ),
        compiler_params=pltpu.CompilerParams(
            dimension_semantics=("parallel",),
            vmem_limit_bytes=32 * 1024 * 1024,   # working set here is << 1 MiB
        ),
    )(x2d, sc2d, wh_big, wkr, bw1, bw2, s1, t1, s2, t2)

    out = out2d.reshape(n, hout, wout, cout)
    return jnp.transpose(out, (0, 3, 1, 2))       # NHWC -> NCHW


# ----------------------------------------------------------------------------
# Pure-JAX reference (all-f32) for correctness checking
# ----------------------------------------------------------------------------
def _reference_forward(params, x_nchw, short_cut_nchw, align_corners=False):
    x = jnp.transpose(x_nchw, (0, 2, 3, 1))
    sc = jnp.transpose(short_cut_nchw, (0, 2, 3, 1))
    hout, wout = sc.shape[1], sc.shape[2]
    wh = _bilinear_matrix(x.shape[1], hout, align_corners)
    ww = _bilinear_matrix(x.shape[2], wout, align_corners)
    x_up = jnp.einsum("nhwc,Hh,Ww->nHWc", x, wh, ww)
    xcat = jnp.concatenate([x_up, sc], axis=-1)

    def cbr(inp, w, s, b):
        y = jax.lax.conv_general_dilated(
            inp, w, window_strides=(1, 1), padding="SAME",
            dimension_numbers=("NHWC", "HWIO", "NHWC"))
        return jnp.maximum(y * s + b, 0.0)

    y = cbr(xcat, params["w1"], params["s1"], params["b1"])
    y = cbr(y, params["w2"], params["s2"], params["b2"])
    return jnp.transpose(y, (0, 3, 1, 2))


if __name__ == "__main__":
    key = jax.random.PRNGKey(0)
    k_x, k_sc, k_p = jax.random.split(key, 3)

    in_channels = 4
    out_channels = 8
    N = 2

    # x is the low-resolution feature map, short_cut is the skip connection.
    x = jax.random.normal(k_x, (N, in_channels, 8, 8), jnp.float32)
    short_cut = jax.random.normal(k_sc, (N, in_channels, 16, 16), jnp.float32)

    params = init_upsampling_params(k_p, in_channels, out_channels)

    out = upsampling_forward(params, x, short_cut, align_corners=False)
    out = jax.block_until_ready(out)

    assert out.shape == (N, out_channels, 16, 16), out.shape
    assert bool(jnp.all(jnp.isfinite(out)))

    ref = _reference_forward(params, x, short_cut, align_corners=False)
    max_err = float(jnp.max(jnp.abs(out - ref)))
    rel_err = float(jnp.linalg.norm(out - ref) / (jnp.linalg.norm(ref) + 1e-12))
    # bf16 MXU inputs/weights with f32 accumulation vs. the all-f32 reference:
    # absolute AND norm-relative checks (per review feedback).
    assert max_err < 0.3, f"max abs error {max_err}"
    assert rel_err < 0.05, f"relative L2 error {rel_err}"

    print("KERNEL_OK")
</pallas_src>

<mosaic_0001>
module attributes {stable_mosaic.version = 11 : i64} {
  func.func private @main(%arg0: i32) attributes {dimension_semantics = [#tpu.dimension_semantics<core_parallel>], iteration_bounds = array<i64: 2>, tpu.core_type = #tpu.core_type<sc_scalar_subcore>, window_params = []} {
    return
  }
}

module attributes {stable_mosaic.version = 11 : i64} {
  func.func private @main(%arg0: i32) attributes {dimension_semantics = [#tpu.dimension_semantics<core_parallel>], iteration_bounds = array<i64: 2>, tpu.core_type = #tpu.core_type<sc_scalar_subcore>, window_params = []} {
    return
  }
}

module attributes {stable_mosaic.version = 11 : i64} {
  func.func @_upsampling_fused_kernel(%arg0: i32, %arg1: memref<16x32xbf16, #tpu.memory_space<vmem>>, %arg2: memref<32x64xbf16, #tpu.memory_space<vmem>>, %arg3: memref<36x16xbf16, #tpu.memory_space<vmem>>, %arg4: memref<32x64xbf16, #tpu.memory_space<vmem>>, %arg5: memref<3x128x128xbf16, #tpu.memory_space<vmem>>, %arg6: memref<3x128x128xbf16, #tpu.memory_space<vmem>>, %arg7: memref<1x128xf32, #tpu.memory_space<vmem>>, %arg8: memref<1x128xf32, #tpu.memory_space<vmem>>, %arg9: memref<1x128xf32, #tpu.memory_space<vmem>>, %arg10: memref<1x128xf32, #tpu.memory_space<vmem>>, %arg11: memref<32x128xf32, #tpu.memory_space<vmem>>) attributes {dimension_semantics = [#tpu.dimension_semantics<parallel>], iteration_bounds = array<i64: 1>, scalar_prefetch = 0 : i64, scratch_operands = 0 : i64, tpu.core_type = #tpu.core_type<tc>, window_params = [{transform_indices = @transform_0, window_bounds = array<i64: 16, 32>}, {transform_indices = @transform_1, window_bounds = array<i64: 32, 64>}, {pipeline_mode = #tpu.pipeline_mode<synchronous>, transform_indices = @transform_2, window_bounds = array<i64: 36, 16>}, {pipeline_mode = #tpu.pipeline_mode<synchronous>, transform_indices = @transform_3, window_bounds = array<i64: 32, 64>}, {pipeline_mode = #tpu.pipeline_mode<synchronous>, transform_indices = @transform_4, window_bounds = array<i64: 3, 128, 128>}, {pipeline_mode = #tpu.pipeline_mode<synchronous>, transform_indices = @transform_5, window_bounds = array<i64: 3, 128, 128>}, {pipeline_mode = #tpu.pipeline_mode<synchronous>, transform_indices = @transform_6, window_bounds = array<i64: 1, 128>}, {pipeline_mode = #tpu.pipeline_mode<synchronous>, transform_indices = @transform_7, window_bounds = array<i64: 1, 128>}, {pipeline_mode = #tpu.pipeline_mode<synchronous>, transform_indices = @transform_8, window_bounds = array<i64: 1, 128>}, {pipeline_mode = #tpu.pipeline_mode<synchronous>, transform_indices = @transform_9, window_bounds = array<i64: 1, 128>}, {transform_indices = @transform_10, window_bounds = array<i64: 32, 128>}]} {
    %c0 = arith.constant 0 : index
    %c0_0 = arith.constant 0 : index
    %0 = vector.load %arg3[%c0, %c0_0] : memref<36x16xbf16, #tpu.memory_space<vmem>>, vector<36x16xbf16>
    %c0_1 = arith.constant 0 : index
    %c0_2 = arith.constant 0 : index
    %1 = vector.load %arg1[%c0_1, %c0_2] : memref<16x32xbf16, #tpu.memory_space<vmem>>, vector<16x32xbf16>
    %cst = arith.constant dense<0.000000e+00> : vector<36x32xf32>
    %2 = tpu.matmul %0, %1, %cst {dimension_numbers = #tpu.dot_dimension_numbers<[1], [0], [0], [1], [0, 0, 1, 1], [], []>} : vector<36x16xbf16>, vector<16x32xbf16>, vector<36x32xf32> -> vector<36x32xf32>
    %3 = arith.truncf %2 : vector<36x32xf32> to vector<36x32xbf16>
    %c0_3 = arith.constant 0 : index
    %c0_4 = arith.constant 0 : index
    %4 = vector.load %arg4[%c0_3, %c0_4] : memref<32x64xbf16, #tpu.memory_space<vmem>>, vector<32x64xbf16>
    %cst_5 = arith.constant dense<0.000000e+00> : vector<36x64xf32>
    %5 = tpu.matmul %3, %4, %cst_5 {dimension_numbers = #tpu.dot_dimension_numbers<[1], [0], [0], [1], [0, 0, 1, 1], [], []>} : vector<36x32xbf16>, vector<32x64xbf16>, vector<36x64xf32> -> vector<36x64xf32>
    %cst_6 = arith.constant 0.000000e+00 : bf16
    %6 = vector.broadcast %cst_6 : bf16 to vector<1x64xbf16>
    %c0_7 = arith.constant 0 : index
    %c0_8 = arith.constant 0 : index
    %7 = vector.load %arg2[%c0_7, %c0_8] : memref<32x64xbf16, #tpu.memory_space<vmem>>, vector<32x64xbf16>
    %8 = vector.extract_strided_slice %7 {offsets = [0, 0], sizes = [16, 64], strides = [1, 1]} : vector<32x64xbf16> to vector<16x64xbf16>
    %9 = vector.extract_strided_slice %7 {offsets = [16, 0], sizes = [16, 64], strides = [1, 1]} : vector<32x64xbf16> to vector<16x64xbf16>
    %10 = tpu.concatenate %6, %8, %6, %6, %9, %6 in 0 : vector<1x64xbf16>, vector<16x64xbf16>, vector<1x64xbf16>, vector<1x64xbf16>, vector<16x64xbf16>, vector<1x64xbf16> -> vector<36x64xbf16>
    %11 = arith.truncf %5 : vector<36x64xf32> to vector<36x64xbf16>
    %12 = tpu.concatenate %11, %10 in 1 : vector<36x64xbf16>, vector<36x64xbf16> -> vector<36x128xbf16>
    %cst_9 = arith.constant 0.000000e+00 : f32
    %13 = vector.broadcast %cst_9 : f32 to vector<34x128xf32>
    %14 = vector.extract_strided_slice %12 {offsets = [0, 0], sizes = [34, 128], strides = [1, 1]} : vector<36x128xbf16> to vector<34x128xbf16>
    %c0_10 = arith.constant 0 : index
    %c0_11 = arith.constant 0 : index
    %c0_12 = arith.constant 0 : index
    %15 = vector.load %arg5[%c0_10, %c0_11, %c0_12] : memref<3x128x128xbf16, #tpu.memory_space<vmem>>, vector<1x128x128xbf16>
    %16 = vector.shape_cast %15 : vector<1x128x128xbf16> to vector<128x128xbf16>
    %cst_13 = arith.constant dense<0.000000e+00> : vector<34x128xf32>
    %17 = tpu.matmul %14, %16, %cst_13 {dimension_numbers = #tpu.dot_dimension_numbers<[1], [0], [0], [1], [0, 0, 1, 1], [], []>} : vector<34x128xbf16>, vector<128x128xbf16>, vector<34x128xf32> -> vector<34x128xf32>
    %18 = arith.addf %13, %17 : vector<34x128xf32>
    %19 = vector.extract_strided_slice %12 {offsets = [1, 0], sizes = [34, 128], strides = [1, 1]} : vector<36x128xbf16> to vector<34x128xbf16>
    %c1 = arith.constant 1 : index
    %c0_14 = arith.constant 0 : index
    %c0_15 = arith.constant 0 : index
    %20 = vector.load %arg5[%c1, %c0_14, %c0_15] : memref<3x128x128xbf16, #tpu.memory_space<vmem>>, vector<1x128x128xbf16>
    %21 = vector.shape_cast %20 : vector<1x128x128xbf16> to vector<128x128xbf16>
    %cst_16 = arith.constant dense<0.000000e+00> : vector<34x128xf32>
    %22 = tpu.matmul %19, %21, %cst_16 {dimension_numbers = #tpu.dot_dimension_numbers<[1], [0], [0], [1], [0, 0, 1, 1], [], []>} : vector<34x128xbf16>, vector<128x128xbf16>, vector<34x128xf32> -> vector<34x128xf32>
    %23 = arith.addf %18, %22 : vector<34x128xf32>
    %24 = vector.extract_strided_slice %12 {offsets = [2, 0], sizes = [34, 128], strides = [1, 1]} : vector<36x128xbf16> to vector<34x128xbf16>
    %c2 = arith.constant 2 : index
    %c0_17 = arith.constant 0 : index
    %c0_18 = arith.constant 0 : index
    %25 = vector.load %arg5[%c2, %c0_17, %c0_18] : memref<3x128x128xbf16, #tpu.memory_space<vmem>>, vector<1x128x128xbf16>
    %26 = vector.shape_cast %25 : vector<1x128x128xbf16> to vector<128x128xbf16>
    %cst_19 = arith.constant dense<0.000000e+00> : vector<34x128xf32>
    %27 = tpu.matmul %24, %26, %cst_19 {dimension_numbers = #tpu.dot_dimension_numbers<[1], [0], [0], [1], [0, 0, 1, 1], [], []>} : vector<34x128xbf16>, vector<128x128xbf16>, vector<34x128xf32> -> vector<34x128xf32>
    %28 = arith.addf %23, %27 : vector<34x128xf32>
    %c0_20 = arith.constant 0 : index
    %c0_21 = arith.constant 0 : index
    %29 = vector.load %arg7[%c0_20, %c0_21] : memref<1x128xf32, #tpu.memory_space<vmem>>, vector<1x128xf32>
    %30 = vector.broadcast %29 : vector<1x128xf32> to vector<34x128xf32>
    %31 = arith.mulf %28, %30 : vector<34x128xf32>
    %c0_22 = arith.constant 0 : index
    %c0_23 = arith.constant 0 : index
    %32 = vector.load %arg8[%c0_22, %c0_23] : memref<1x128xf32, #tpu.memory_space<vmem>>, vector<1x128xf32>
    %33 = vector.broadcast %32 : vector<1x128xf32> to vector<34x128xf32>
    %34 = arith.addf %31, %33 : vector<34x128xf32>
    %cst_24 = arith.constant 0.000000e+00 : f32
    %35 = vector.broadcast %cst_24 : f32 to vector<34x128xf32>
    %36 = arith.maximumf %34, %35 : vector<34x128xf32>
    %37 = arith.truncf %36 : vector<34x128xf32> to vector<34x128xbf16>
    %cst_25 = arith.constant 0.000000e+00 : bf16
    %38 = vector.broadcast %cst_25 : bf16 to vector<1x128xbf16>
    %39 = vector.extract_strided_slice %37 {offsets = [0, 0], sizes = [16, 128], strides = [1, 1]} : vector<34x128xbf16> to vector<16x128xbf16>
    %40 = vector.extract_strided_slice %37 {offsets = [18, 0], sizes = [16, 128], strides = [1, 1]} : vector<34x128xbf16> to vector<16x128xbf16>
    %41 = tpu.concatenate %38, %39, %38, %38, %40, %38 in 0 : vector<1x128xbf16>, vector<16x128xbf16>, vector<1x128xbf16>, vector<1x128xbf16>, vector<16x128xbf16>, vector<1x128xbf16> -> vector<36x128xbf16>
    %cst_26 = arith.constant 0.000000e+00 : f32
    %42 = vector.broadcast %cst_26 : f32 to vector<34x128xf32>
    %43 = vector.extract_strided_slice %41 {offsets = [0, 0], sizes = [34, 128], strides = [1, 1]} : vector<36x128xbf16> to vector<34x128xbf16>
    %c0_27 = arith.constant 0 : index
    %c0_28 = arith.constant 0 : index
    %c0_29 = arith.constant 0 : index
    %44 = vector.load %arg6[%c0_27, %c0_28, %c0_29] : memref<3x128x128xbf16, #tpu.memory_space<vmem>>, vector<1x128x128xbf16>
    %45 = vector.shape_cast %44 : vector<1x128x128xbf16> to vector<128x128xbf16>
    %cst_30 = arith.constant dense<0.000000e+00> : vector<34x128xf32>
    %46 = tpu.matmul %43, %45, %cst_30 {dimension_numbers = #tpu.dot_dimension_numbers<[1], [0], [0], [1], [0, 0, 1, 1], [], []>} : vector<34x128xbf16>, vector<128x128xbf16>, vector<34x128xf32> -> vector<34x128xf32>
    %47 = arith.addf %42, %46 : vector<34x128xf32>
    %48 = vector.extract_strided_slice %41 {offsets = [1, 0], sizes = [34, 128], strides = [1, 1]} : vector<36x128xbf16> to vector<34x128xbf16>
    %c1_31 = arith.constant 1 : index
    %c0_32 = arith.constant 0 : index
    %c0_33 = arith.constant 0 : index
    %49 = vector.load %arg6[%c1_31, %c0_32, %c0_33] : memref<3x128x128xbf16, #tpu.memory_space<vmem>>, vector<1x128x128xbf16>
    %50 = vector.shape_cast %49 : vector<1x128x128xbf16> to vector<128x128xbf16>
    %cst_34 = arith.constant dense<0.000000e+00> : vector<34x128xf32>
    %51 = tpu.matmul %48, %50, %cst_34 {dimension_numbers = #tpu.dot_dimension_numbers<[1], [0], [0], [1], [0, 0, 1, 1], [], []>} : vector<34x128xbf16>, vector<128x128xbf16>, vector<34x128xf32> -> vector<34x128xf32>
    %52 = arith.addf %47, %51 : vector<34x128xf32>
    %53 = vector.extract_strided_slice %41 {offsets = [2, 0], sizes = [34, 128], strides = [1, 1]} : vector<36x128xbf16> to vector<34x128xbf16>
    %c2_35 = arith.constant 2 : index
    %c0_36 = arith.constant 0 : index
    %c0_37 = arith.constant 0 : index
    %54 = vector.load %arg6[%c2_35, %c0_36, %c0_37] : memref<3x128x128xbf16, #tpu.memory_space<vmem>>, vector<1x128x128xbf16>
    %55 = vector.shape_cast %54 : vector<1x128x128xbf16> to vector<128x128xbf16>
    %cst_38 = arith.constant dense<0.000000e+00> : vector<34x128xf32>
    %56 = tpu.matmul %53, %55, %cst_38 {dimension_numbers = #tpu.dot_dimension_numbers<[1], [0], [0], [1], [0, 0, 1, 1], [], []>} : vector<34x128xbf16>, vector<128x128xbf16>, vector<34x128xf32> -> vector<34x128xf32>
    %57 = arith.addf %52, %56 : vector<34x128xf32>
    %c0_39 = arith.constant 0 : index
    %c0_40 = arith.constant 0 : index
    %58 = vector.load %arg9[%c0_39, %c0_40] : memref<1x128xf32, #tpu.memory_space<vmem>>, vector<1x128xf32>
    %59 = vector.broadcast %58 : vector<1x128xf32> to vector<34x128xf32>
    %60 = arith.mulf %57, %59 : vector<34x128xf32>
    %c0_41 = arith.constant 0 : index
    %c0_42 = arith.constant 0 : index
    %61 = vector.load %arg10[%c0_41, %c0_42] : memref<1x128xf32, #tpu.memory_space<vmem>>, vector<1x128xf32>
    %62 = vector.broadcast %61 : vector<1x128xf32> to vector<34x128xf32>
    %63 = arith.addf %60, %62 : vector<34x128xf32>
    %cst_43 = arith.constant 0.000000e+00 : f32
    %64 = vector.broadcast %cst_43 : f32 to vector<34x128xf32>
    %65 = arith.maximumf %63, %64 : vector<34x128xf32>
    %66 = vector.extract_strided_slice %65 {offsets = [0, 0], sizes = [16, 128], strides = [1, 1]} : vector<34x128xf32> to vector<16x128xf32>
    %67 = vector.extract_strided_slice %65 {offsets = [18, 0], sizes = [16, 128], strides = [1, 1]} : vector<34x128xf32> to vector<16x128xf32>
    %68 = tpu.concatenate %66, %67 in 0 : vector<16x128xf32>, vector<16x128xf32> -> vector<32x128xf32>
    %c0_44 = arith.constant 0 : index
    %c0_45 = arith.constant 0 : index
    %69 = vector.load %arg11[%c0_44, %c0_45] : memref<32x128xf32, #tpu.memory_space<vmem>>, vector<32x128xf32>
    tpu.vector_store %arg11[%c0_44, %c0_45], %68 {strides = array<i32>} : memref<32x128xf32, #tpu.memory_space<vmem>>, vector<32x128xf32>,
    return
  }
  func.func @transform_0(%arg0: i32) -> (i32, i32) {
    %c0_i32 = arith.constant 0 : i32
    %c0_i32_0 = arith.constant 0 : i32
    return %arg0, %c0_i32 : i32, i32
  }
  func.func @transform_1(%arg0: i32) -> (i32, i32) {
    %c0_i32 = arith.constant 0 : i32
    %c0_i32_0 = arith.constant 0 : i32
    return %arg0, %c0_i32 : i32, i32
  }
  func.func @transform_2(%arg0: i32) -> (i32, i32) {
    %c0_i32 = arith.constant 0 : i32
    %c0_i32_0 = arith.constant 0 : i32
    %c0_i32_1 = arith.constant 0 : i32
    return %c0_i32, %c0_i32_0 : i32, i32
  }
  func.func @transform_3(%arg0: i32) -> (i32, i32) {
    %c0_i32 = arith.constant 0 : i32
    %c0_i32_0 = arith.constant 0 : i32
    %c0_i32_1 = arith.constant 0 : i32
    return %c0_i32, %c0_i32_0 : i32, i32
  }
  func.func @transform_4(%arg0: i32) -> (i32, i32, i32) {
    %c0_i32 = arith.constant 0 : i32
    %c0_i32_0 = arith.constant 0 : i32
    %c0_i32_1 = arith.constant 0 : i32
    %c0_i32_2 = arith.constant 0 : i32
    return %c0_i32, %c0_i32_0, %c0_i32_1 : i32, i32, i32
  }
  func.func @transform_5(%arg0: i32) -> (i32, i32, i32) {
    %c0_i32 = arith.constant 0 : i32
    %c0_i32_0 = arith.constant 0 : i32
    %c0_i32_1 = arith.constant 0 : i32
    %c0_i32_2 = arith.constant 0 : i32
    return %c0_i32, %c0_i32_0, %c0_i32_1 : i32, i32, i32
  }
  func.func @transform_6(%arg0: i32) -> (i32, i32) {
    %c0_i32 = arith.constant 0 : i32
    %c0_i32_0 = arith.constant 0 : i32
    %c0_i32_1 = arith.constant 0 : i32
    return %c0_i32, %c0_i32_0 : i32, i32
  }
  func.func @transform_7(%arg0: i32) -> (i32, i32) {
    %c0_i32 = arith.constant 0 : i32
    %c0_i32_0 = arith.constant 0 : i32
    %c0_i32_1 = arith.constant 0 : i32
    return %c0_i32, %c0_i32_0 : i32, i32
  }
  func.func @transform_8(%arg0: i32) -> (i32, i32) {
    %c0_i32 = arith.constant 0 : i32
    %c0_i32_0 = arith.constant 0 : i32
    %c0_i32_1 = arith.constant 0 : i32
    return %c0_i32, %c0_i32_0 : i32, i32
  }
  func.func @transform_9(%arg0: i32) -> (i32, i32) {
    %c0_i32 = arith.constant 0 : i32
    %c0_i32_0 = arith.constant 0 : i32
    %c0_i32_1 = arith.constant 0 : i32
    return %c0_i32, %c0_i32_0 : i32, i32
  }
  func.func @transform_10(%arg0: i32) -> (i32, i32) {
    %c0_i32 = arith.constant 0 : i32
    %c0_i32_0 = arith.constant 0 : i32
    return %arg0, %c0_i32 : i32, i32
  }
}

</mosaic_0001>

<bundles_post_ra>
// kernel: upsampling_forward.1
= control target key start
LH: loop header
LB: loop body
LE: loop exit
PB: predicated region body
PF: predicated region fallthrough
CT: control target
= control target key end

     0   :  { %v1715_v0 = vmov 0.0   ;;  %vm1716_vm0 = vmmov 0   ;;  %vm62_vm1 = vcmask 130048   ;;  %vm246_vm2 = vsmask.f32 256  ;;  %s1717_s11 = smov 64   ;;  %s2152_s0 = inlined_call_operand.vmem [shape: bf16[16,32], index: 0, kind: input, shape index: {}]   ;;  %s2153_s2 = inlined_call_operand.vmem [shape: bf16[36,16], index: 2, kind: input, shape index: {}]   ;;  %s2154_s3 = inlined_call_operand.vmem [shape: bf16[32,64], index: 3, kind: input, shape index: {}]   ;;  %s2155_s1 = inlined_call_operand.vmem [shape: bf16[32,64], index: 1, kind: input, shape index: {}]   ;;  %s2156_s4 = inlined_call_operand.vmem [shape: bf16[3,128,128], index: 4, kind: input, shape index: {}]   ;;  %s2157_s5 = inlined_call_operand.vmem [shape: bf16[3,128,128], index: 5, kind: input, shape index: {}]   ;;  %s2158_s6 = inlined_call_operand.vmem [shape: f32[1,128], index: 6, kind: input, shape index: {}]   ;;  %s2159_s7 = inlined_call_operand.vmem [shape: f32[1,128], index: 7, kind: input, shape index: {}]   ;;  %s2160_s8 = inlined_call_operand.vmem [shape: f32[1,128], index: 8, kind: input, shape index: {}]   ;;  %s2161_s9 = inlined_call_operand.vmem [shape: f32[1,128], index: 9, kind: input, shape index: {}]   ;;  %s2162_s10 = inlined_call_operand.vmem [shape: f32[32,128], index: 10, kind: output, shape index: {}]  }
   0x1   :  { %1410 = vmatprep.subr.bf16.mxu0 %v1715_v0  ;;  %v1659_v1 = vld [vmem:[%s2152_s0] sm:$0xff]   ;;  %1412 = vmatprep.mubr.msk.bf16.mxu0 %vm1716_vm0, %v1715_v0  ;;  %v1661_v4 = vld [vmem:[%s2153_s2 + $0x8] sm:$0xff]   ;;  %v1662_v5 = vld [vmem:[%s2153_s2 + $0x10] ss:$0 sps:$4 sm:$0x33]   ;;  %vm245_vm3 = vcmask 1040384  }
   0x2   :  { %v1660_v2 = vld [vmem:[%s2153_s2] sm:$0xff]   ;;  %1424 = vmatprep.subr.bf16.mxu1 %v1715_v0  ;;  %1428 = vmatprep.mubr.msk.bf16.mxu1 %vm1716_vm0, %v1715_v0  ;;  %v1664_v6 = vld [vmem:[%s2154_s3 + $0x8] sm:$0xff]   ;;  %vm256_vm4 = vsmask.f32 1280  ;;  %vm1817_vm5 = vmand %vm245_vm3, %vm246_vm2  ;;  %vm255_vm6 = vcmask 1041408   ;;  %vm147_vm8 = vcmask 261120  }
   0x3   :  { %1411 = vmatpush3.bf16.msra.mxu0 %v1659_v1  ;;  %v1663_v3 = vld [vmem:[%s2154_s3] sm:$0xff]   ;;  %v1666_v10 = vld [vmem:[%s2155_s1 + $0x8] sm:$0xff]   ;;  %vm1829_vm7 = vmand %vm255_vm6, %vm256_vm4  ;;  %vm272_vm9 = vcmask 523264   ;;  %vm570_vm10 = vcmask 1046528   ;;  %vm318_vm11 = vsmask.f32 7424 }
   0x4   :  { %1440 = vmatprep.subr.bf16.mxu0 %v1715_v0  ;;  %1425 = vmatpush3.bf16.msra.mxu1 %v1663_v3  ;;  %v1665_v7 = vld [vmem:[%s2155_s1] sm:$0xff]   ;;  %v237_v14 = vshrl.u32 %v1666_v10, 16  ;;  %v240_v15 = vshll.u32 %v1666_v10, 16  ;;  %v1668_v16 = vld [vmem:[%s2156_s4 + $0x48] sm:$0xff]   ;;  %v1669_v25 = vld [vmem:[%s2156_s4 + $0x50] sm:$0xff]   ;;  %vm1189_vm12 = vcmask 1045504  }
   0x5   :  { %1426 = vmatprep.subr.bf16.mxu1 %v1715_v0  ;;  %v223_v8 = vshrl.u32 %v1665_v7, 16  ;;  %v226_v9 = vshll.u32 %v1665_v7, 16  ;;  %v1667_v11 = vld [vmem:[%s2156_s4 + $0x40] sm:$0xff]   ;;  %v1670_v28 = vld [vmem:[%s2156_s4 + $0x58] sm:$0xff]   ;;  %v1672_v45 = vld [vmem:[%s2156_s4 + $0x68] sm:$0xff]  }
   0x6   :  { %1413 = vmatmul.mubr.msk.bf16.vlgmr.msra.gmra.mrb[0].mxu0 %vm62_vm1, %v1660_v2  ;;  %v239_v18 = vrot.slane %v237_v14, 6  ;;  %v242_v19 = vrot.slane %v240_v15, 7  ;;  %v1671_v44 = vld [vmem:[%s2156_s4 + $0x60] sm:$0xff]   ;;  %v1673_v46 = vld [vmem:[%s2156_s4 + $0x70] sm:$0xff]   ;;  %v1674_v47 = vld [vmem:[%s2156_s4 + $0x78] sm:$0xff]  }
   0x7   :  { %1416 = vmatprep.mubr.msk.bf16.mxu0 %vm1716_vm0, %v1715_v0  ;;  %v225_v12 = vrot.slane %v223_v8, 7  ;;  %1441 = vmatpush3.bf16.msra.mxu0 %v1667_v11  ;;  %v1691_v48 = vld [vmem:[%s2157_s5 + $0x40] sm:$0xff]   ;;  %v1701_v22 = vld [vmem:[%s2157_s5 + $0x10] sm:$0xff]  }
   0x8   :  { %1427 = vmatpush3.bf16.msra.mxu1 %v1664_v6  ;;  %1442 = vmatprep.subr.bf16.mxu0 %v1715_v0  ;;  %v243_v24 = vor.u32 %v242_v19, %v239_v18  ;;  %v1675_v10 = vld [vmem:[%s2156_s4] sm:$0xff]  }
   0x9   :  { %1524 = vmatprep.subr.bf16.mxu1 %v1715_v0  ;;  %v228_v17 = vor.u32 %v226_v9, %v225_v12  ;;  %v249_v20 = vsel %vm1817_vm5, %v225_v12, 0 }
   0xa   :  { %v253_v21 = vsel %vm245_vm3, %v249_v20, 0  ;;  %v259_v27 = vsel %vm1829_vm7, %v243_v24, 0 }
   0xb   :  { %v248_v23 = vsel %vm1817_vm5, 0, %v228_v17  ;;  %1443 = vmatpush3.bf16.msra.mxu0 %v1668_v16  ;;  %v258_v26 = vsel %vm1829_vm7, %v253_v21, %v243_v24  ;;  %270 = vrot.lane.b32.xlu1 %v259_v27, %s1717_s11 }
   0xc   :  { %266 = vrot.lane.b32.xlu0 %v248_v23, %s1717_s11  ;;  %1444 = vmatprep.subr.bf16.mxu0 %v1715_v0  ;;  %v1676_v23 = vld [vmem:[%s2156_s4 + $0x8] sm:$0xff]  }
   0xe   :  { %1417 = vmatmul.mubr.msk.bf16.gmra.mrb[4].mxu0 %vm62_vm1, %v1661_v4 }
   0xf   :  { %1420 = vmatprep.mubr.msk.bf16.mxu0 %vm1716_vm0, %v1715_v0  ;;  %1445 = vmatpush3.bf16.msra.mxu0 %v1669_v25 }
  0x10   :  { %268 = vrot.lane.b32.xlu0 %v258_v26, %s1717_s11  ;;  %1446 = vmatprep.subr.bf16.mxu0 %v1715_v0 }
  0x13   :  { %1447 = vmatpush3.bf16.msra.mxu0 %v1670_v28  ;;  %v1677_v28 = vld [vmem:[%s2156_s4 + $0x10] sm:$0xff]  }
  0x14   :  { %1448 = vmatprep.subr.bf16.mxu0 %v1715_v0 }
  0x16   :  { %1421 = vmatmul.mubr.msk.bf16.gmra.mrb[8].mxu0 %vm62_vm1, %v1662_v5 }
  0x17   :  { %1456 = vmatprep.mubr.msk.bf16.mxu0 %vm1716_vm0, %v1715_v0  ;;  %1449 = vmatpush3.bf16.msra.mxu0 %v1671_v44  ;;  %v1692_v44 = vld [vmem:[%s2157_s5 + $0x48] sm:$0xff]  }
  0x18   :  { %1450 = vmatprep.subr.bf16.mxu0 %v1715_v0 }
  0x1b   :  { %1451 = vmatpush3.bf16.msra.mxu0 %v1672_v45  ;;  %v1693_v45 = vld [vmem:[%s2157_s5 + $0x50] sm:$0xff]  }
  0x1c   :  { %1452 = vmatprep.subr.bf16.mxu0 %v1715_v0 }
  0x1f   :  { %1453 = vmatpush3.bf16.msra.mxu0 %v1673_v46  ;;  %v1694_v46 = vld [vmem:[%s2157_s5 + $0x58] sm:$0xff]  }
  0x20   :  { %1454 = vmatprep.subr.bf16.mxu0 %v1715_v0 }
  0x23   :  { %1455 = vmatpush3.bf16.msra.mxu0 %v1674_v47  ;;  %v1695_v47 = vld [vmem:[%s2157_s5 + $0x60] sm:$0xff]  }
  0x24   :  { %1468 = vmatprep.subr.bf16.mxu0 %v1715_v0 }
  0x7d   :  { %v271_v9 = vpop.permute.xlu1 %270 }
  0x7e   :  { %v267_v52 = vpop.permute.xlu0 %266 }
  0x82   :  { %v269_v60 = vpop.permute.xlu0 %268 }
  0xd9   :  { %v106_v29 = vpop.f32.mrb[0].mxu0 }
  0xda   :  { %v1414_v30 = vpop.f32.mrb[1].mxu0 }
  0xdb   :  { %v109_v31 = vpop.f32.mrb[2].mxu0  ;;  %v1678_v30 = vld [vmem:[%s2156_s4 + $0x18] sm:$0xff]  }
  0xdc   :  { %v128_v32 = vpack.c.bf16 %v109_v31, %v106_v29  ;;  %v1415_v33 = vpop.f32.mrb[3].mxu0 }
  0xdd   :  { %v1680_v33 = vld [vmem:[%s2156_s4 + $0x28] sm:$0xff]  }
  0xde   :  { %1429 = vmatmul.mubr.msk.bf16.vlgmr.msra.gmra.mrb[0].mxu1 %vm147_vm8, %v128_v32  ;;  %v1679_v32 = vld [vmem:[%s2156_s4 + $0x20] sm:$0xff]  }
  0xdf   :  { %1432 = vmatprep.mubr.msk.bf16.mxu1 %vm1716_vm0, %v1715_v0  ;;  %1525 = vmatpush3.bf16.msra.mxu1 %v1691_v48  ;;  %v1696_v48 = vld [vmem:[%s2157_s5 + $0x68] sm:$0xff]  }
  0xe0   :  { %1526 = vmatprep.subr.bf16.mxu1 %v1715_v0 }
  0xe1   :  { %v114_v34 = vpop.f32.mrb[4].mxu0 }
  0xe2   :  { %v1418_v35 = vpop.f32.mrb[5].mxu0 }
  0xe3   :  { %v117_v36 = vpop.f32.mrb[6].mxu0  ;;  %v1682_v35 = vld [vmem:[%s2156_s4 + $0x38] sm:$0xff]   ;;  %1527 = vmatpush3.bf16.msra.mxu1 %v1692_v44  ;;  %v1699_v44 = vld [vmem:[%s2157_s5] sm:$0xff]  }
  0xe4   :  { %v129_v37 = vpack.c.bf16 %v117_v36, %v114_v34  ;;  %v1419_v38 = vpop.f32.mrb[7].mxu0  ;;  %v1681_v34 = vld [vmem:[%s2156_s4 + $0x30] sm:$0xff]   ;;  %v1683_v36 = vld [vmem:[%s2156_s4 + $0x80] sm:$0xff]   ;;  %1528 = vmatprep.subr.bf16.mxu1 %v1715_v0 }
  0xe5   :  { %v1685_v38 = vld [vmem:[%s2156_s4 + $0x90] sm:$0xff]  }
  0xe6   :  { %1433 = vmatmul.mubr.msk.bf16.gmra.mrb[4].mxu1 %vm147_vm8, %v129_v37  ;;  %v1684_v37 = vld [vmem:[%s2156_s4 + $0x88] sm:$0xff]  }
  0xe7   :  { %1436 = vmatprep.mubr.msk.bf16.mxu1 %vm1716_vm0, %v1715_v0  ;;  %1529 = vmatpush3.bf16.msra.mxu1 %v1693_v45 }
  0xe8   :  { %1530 = vmatprep.subr.bf16.mxu1 %v1715_v0 }
  0xe9   :  { %v122_v39 = vpop.f32.mrb[8].mxu0 }
  0xea   :  { %v130_v40 = vpack.c.bf16 %v122_v39, %v122_v39  ;;  %v1422_v41 = vpop.f32.mrb[9].mxu0  ;;  %v1686_v39 = vld [vmem:[%s2156_s4 + $0x98] sm:$0xff]  }
  0xeb   :  { %v125_v42 = vpop.f32.mrb[10].mxu0  ;;  %v1688_v41 = vld [vmem:[%s2156_s4 + $0xa8] sm:$0xff]   ;;  %1531 = vmatpush3.bf16.msra.mxu1 %v1694_v46 }
  0xec   :  { %v1423_v43 = vpop.f32.mrb[11].mxu0  ;;  %v1689_v42 = vld [vmem:[%s2156_s4 + $0xb0] sm:$0xff]   ;;  %1532 = vmatprep.subr.bf16.mxu1 %v1715_v0 }
  0xed   :  { %v1690_v43 = vld [vmem:[%s2156_s4 + $0xb8] sm:$0xff]  }
  0xee   :  { %1437 = vmatmul.mubr.msk.bf16.gmra.mrb[8].mxu1 %vm147_vm8, %v130_v40  ;;  %v1687_v40 = vld [vmem:[%s2156_s4 + $0xa0] sm:$0xff]  }
  0xef   :  { %1540 = vmatprep.mubr.msk.bf16.mxu1 %vm1716_vm0, %v1715_v0  ;;  %1533 = vmatpush3.bf16.msra.mxu1 %v1695_v47 }
  0xf0   :  { %1534 = vmatprep.subr.bf16.mxu1 %v1715_v0 }
  0xf3   :  { %1535 = vmatpush3.bf16.msra.mxu1 %v1696_v48 }
  0xf4   :  { %1536 = vmatprep.subr.bf16.mxu1 %v1715_v0 }
 0x1b1   :  { %v191_v49 = vpop.f32.mrb[0].mxu1 }
 0x1b2   :  { %v1430_v50 = vpop.f32.mrb[1].mxu1 }
 0x1b3   :  { %v194_v51 = vpop.f32.mrb[2].mxu1  ;;  %v1698_v50 = vld [vmem:[%s2157_s5 + $0x78] sm:$0xff]  }
 0x1b4   :  { %v260_v53 = vpack.c.bf16 %v194_v51, %v191_v49  ;;  %v1431_v54 = vpop.f32.mrb[3].mxu1  ;;  %v1697_v49 = vld [vmem:[%s2157_s5 + $0x70] sm:$0xff]   ;;  %v1275_v51 = vld [vmem:[%s2158_s6] ss:$0 sm:$0xff] }
 0x1b5   :  { %1537 = vmatpush3.bf16.msra.mxu1 %v1697_v49  ;;  %v1700_v49 = vld [vmem:[%s2157_s5 + $0x8] sm:$0xff]  }
 0x1b6   :  { %v1878_v55 = vsel %vm272_vm9, %v260_v53, %v267_v52  ;;  %1538 = vmatprep.subr.bf16.mxu1 %v1715_v0  ;;  %v1276_v53 = vld [vmem:[%s2159_s7] ss:$0 sm:$0xff] }
 0x1b7   :  { %v321_v56 = vshll.u32 %v1878_v55, 16  ;;  %v319_v2 = vshrl.u32 %v1878_v55, 16  ;;  %v571_v3 = vrot.slane %v1878_v55, 1 }
 0x1b9   :  { %v199_v57 = vpop.f32.mrb[4].mxu1  ;;  %v323_v63 = vrot.slane %v321_v56, 1  ;;  %1539 = vmatpush3.bf16.msra.mxu1 %v1698_v50 }
 0x1ba   :  { %v1434_v58 = vpop.f32.mrb[5].mxu1  ;;  %1552 = vmatprep.subr.bf16.mxu1 %v1715_v0 }
 0x1bb   :  { %v202_v59 = vpop.f32.mrb[6].mxu1  ;;  %v324_v6 = vor.u32 %v323_v63, %v319_v2 }
 0x1bc   :  { %v261_v61 = vpack.c.bf16 %v202_v59, %v199_v57  ;;  %v1435_v62 = vpop.f32.mrb[7].mxu1 }
 0x1be   :  { %v1882_v1 = vsel %vm272_vm9, %v261_v61, %v269_v60 }
 0x1bf   :  { %v325_v4 = vshll.u32 %v1882_v1, 16  ;;  %v572_v5 = vrot.slane %v1882_v1, 1  ;;  %v329_v19 = vshrl.u32 %v1882_v1, 16 }
 0x1c1   :  { %v327_v7 = vrot.slane %v325_v4, 1  ;;  %v207_v8 = vpop.f32.mrb[8].mxu1  ;;  %v1892_v11 = vsel %vm570_vm10, %v571_v3, %v572_v5 }
 0x1c2   :  { %v262_v12 = vpack.c.bf16 %v207_v8, %v207_v8  ;;  %v1438_v14 = vpop.f32.mrb[9].mxu1 }
 0x1c3   :  { %v328_v15 = vsel %vm318_vm11, %v324_v6, %v327_v7  ;;  %v210_v16 = vpop.f32.mrb[10].mxu1  ;;  %v331_v24 = vor.u32 %v329_v19, %v327_v7 }
 0x1c4   :  { %v1896_v17 = vsel %vm272_vm9, %v262_v12, %v271_v9  ;;  %1457 = vmatmul.mubr.bf16.vlgmr.msra.gmra.mrb[12].mxu0 %v328_v15  ;;  %v1439_v18 = vpop.f32.mrb[11].mxu1 }
 0x1c5   :  { %v332_v20 = vshll.u32 %v1896_v17, 16  ;;  %v574_v21 = vrot.slane %v1896_v17, 1  ;;  %1469 = vmatpush3.bf16.msra.mxu0 %v1675_v10  ;;  %1460 = vmatprep.mubr.msk.bf16.mxu0 %vm1716_vm0, %v1715_v0  ;;  %v336_v29 = vshrl.u32 %v1896_v17, 16 }
 0x1c6   :  { %1470 = vmatprep.subr.bf16.mxu0 %v1715_v0 }
 0x1c7   :  { %v334_v25 = vrot.slane %v332_v20, 1  ;;  %v575_v26 = vsel %vm570_vm10, %v572_v5, %v574_v21 }
 0x1c9   :  { %1471 = vmatpush3.bf16.msra.mxu0 %v1676_v23  ;;  %v335_v27 = vsel %vm318_vm11, %v331_v24, %v334_v25  ;;  %v338_v31 = vor.u32 %v336_v29, %v334_v25 }
 0x1ca   :  { %1472 = vmatprep.subr.bf16.mxu0 %v1715_v0 }
 0x1cc   :  { %1461 = vmatmul.mubr.bf16.gmra.mrb[16].mxu0 %v335_v27 }
 0x1cd   :  { %1473 = vmatpush3.bf16.msra.mxu0 %v1677_v28  ;;  %1464 = vmatprep.mubr.msk.bf16.mxu0 %vm1716_vm0, %v1715_v0 }
 0x1ce   :  { %1474 = vmatprep.subr.bf16.mxu0 %v1715_v0 }
 0x1d1   :  { %1475 = vmatpush3.bf16.msra.mxu0 %v1678_v30 }
 0x1d2   :  { %1476 = vmatprep.subr.bf16.mxu0 %v1715_v0 }
 0x1d4   :  { %1465 = vmatmul.mubr.bf16.gmra.mrb[20].mxu0 %v338_v31 }
 0x1d5   :  { %1477 = vmatpush3.bf16.msra.mxu0 %v1679_v32  ;;  %1484 = vmatprep.mubr.msk.bf16.mxu0 %vm1716_vm0, %v1715_v0 }
 0x1d6   :  { %1478 = vmatprep.subr.bf16.mxu0 %v1715_v0 }
 0x1d9   :  { %1479 = vmatpush3.bf16.msra.mxu0 %v1680_v33 }
 0x1da   :  { %1480 = vmatprep.subr.bf16.mxu0 %v1715_v0 }
 0x1dd   :  { %1481 = vmatpush3.bf16.msra.mxu0 %v1681_v34 }
 0x1de   :  { %1482 = vmatprep.subr.bf16.mxu0 %v1715_v0 }
 0x1e1   :  { %1483 = vmatpush3.bf16.msra.mxu0 %v1682_v35 }
 0x1e2   :  { %1496 = vmatprep.subr.bf16.mxu0 %v1715_v0 }
 0x1e4   :  { %1485 = vmatmul.mubr.bf16.vlgmr.msra.gmra.mrb[12].mxu0 %v1878_v55 }
 0x1e5   :  { %1497 = vmatpush3.bf16.msra.mxu0 %v1683_v36  ;;  %1488 = vmatprep.mubr.msk.bf16.mxu0 %vm1716_vm0, %v1715_v0 }
 0x1e6   :  { %1498 = vmatprep.subr.bf16.mxu0 %v1715_v0 }
 0x1e9   :  { %1499 = vmatpush3.bf16.msra.mxu0 %v1684_v37 }
 0x1ea   :  { %1500 = vmatprep.subr.bf16.mxu0 %v1715_v0 }
 0x1ec   :  { %1489 = vmatmul.mubr.bf16.gmra.mrb[16].mxu0 %v1882_v1 }
 0x1ed   :  { %1501 = vmatpush3.bf16.msra.mxu0 %v1685_v38  ;;  %1492 = vmatprep.mubr.msk.bf16.mxu0 %vm1716_vm0, %v1715_v0 }
 0x1ee   :  { %1502 = vmatprep.subr.bf16.mxu0 %v1715_v0 }
 0x1f1   :  { %1503 = vmatpush3.bf16.msra.mxu0 %v1686_v39 }
 0x1f2   :  { %1504 = vmatprep.subr.bf16.mxu0 %v1715_v0 }
 0x1f4   :  { %1493 = vmatmul.mubr.bf16.gmra.mrb[20].mxu0 %v1896_v17 }
 0x1f5   :  { %1505 = vmatpush3.bf16.msra.mxu0 %v1687_v40  ;;  %1512 = vmatprep.mubr.msk.bf16.mxu0 %vm1716_vm0, %v1715_v0 }
 0x1f6   :  { %1506 = vmatprep.subr.bf16.mxu0 %v1715_v0 }
 0x1f9   :  { %1507 = vmatpush3.bf16.msra.mxu0 %v1688_v41 }
 0x1fa   :  { %1508 = vmatprep.subr.bf16.mxu0 %v1715_v0 }
 0x1fd   :  { %1509 = vmatpush3.bf16.msra.mxu0 %v1689_v42 }
 0x1fe   :  { %1510 = vmatprep.subr.bf16.mxu0 %v1715_v0 }
 0x201   :  { %1511 = vmatpush3.bf16.msra.mxu0 %v1690_v43 }
 0x204   :  { %1513 = vmatmul.mubr.bf16.vlgmr.msra.gmra.mrb[12].mxu0 %v1892_v11 }
 0x205   :  { %1516 = vmatprep.mubr.msk.bf16.mxu0 %vm1716_vm0, %v1715_v0 }
 0x20c   :  { %1517 = vmatmul.mubr.bf16.gmra.mrb[16].mxu0 %v575_v26 }
 0x20d   :  { %1520 = vmatprep.mubr.msk.bf16.mxu0 %vm1716_vm0, %v1715_v0 }
 0x214   :  { %1521 = vmatmul.mubr.bf16.gmra.mrb[20].mxu0 %v574_v21 }
 0x2d7   :  { %v661_v52 = vpop.f32.mrb[12].mxu0 }
 0x2d8   :  { %v695_v54 = vmul.f32 %v1275_v51, %v661_v52  ;;  %v1514_v55 = vpop.f32.mrb[13].mxu0 }
 0x2d9   :  { %v664_v56 = vpop.f32.mrb[14].mxu0 }
 0x2da   :  { %v707_v57 = vadd.f32 %v1276_v53, %v695_v54  ;;  %v696_v58 = vmul.f32 %v1275_v51, %v664_v56  ;;  %v1515_v59 = vpop.f32.mrb[15].mxu0 }
 0x2dc   :  { %v708_v60 = vadd.f32 %v1276_v53, %v696_v58  ;;  %v712_v61 = vmax.f32 %v707_v57, 0.0  ;;  %v1702_v58 = vld [vmem:[%s2157_s5 + $0x18] sm:$0xff]  }
 0x2de   :  { %v713_v62 = vmax.f32 %v708_v60, 0.0  ;;  %v1703_v60 = vld [vmem:[%s2157_s5 + $0x20] sm:$0xff]  }
 0x2df   :  { %v669_v63 = vpop.f32.mrb[16].mxu0 }
 0x2e0   :  { %v717_v1 = vpack.c.bf16 %v713_v62, %v712_v61  ;;  %v697_v2 = vmul.f32 %v1275_v51, %v669_v63  ;;  %v1518_v3 = vpop.f32.mrb[17].mxu0  ;;  %v1704_v62 = vld [vmem:[%s2157_s5 + $0x28] sm:$0xff]   ;;  %v1705_v63 = vld [vmem:[%s2157_s5 + $0x30] sm:$0xff]  }
 0x2e1   :  { %v672_v4 = vpop.f32.mrb[18].mxu0  ;;  %v1708_v3 = vld [vmem:[%s2157_s5 + $0x88] sm:$0xff]  }
 0x2e2   :  { %v721_v5 = vshrl.u32 %v717_v1, 16  ;;  %v709_v6 = vadd.f32 %v1276_v53, %v697_v2  ;;  %v698_v7 = vmul.f32 %v1275_v51, %v672_v4  ;;  %v1519_v8 = vpop.f32.mrb[19].mxu0  ;;  %v724_v10 = vshll.u32 %v717_v1, 16  ;;  %v1706_v1 = vld [vmem:[%s2157_s5 + $0x38] sm:$0xff]   ;;  %v1707_v2 = vld [vmem:[%s2157_s5 + $0x80] sm:$0xff]   ;;  %v1709_v4 = vld [vmem:[%s2157_s5 + $0x90] sm:$0xff]  }
 0x2e3   :  { %v1713_v8 = vld [vmem:[%s2157_s5 + $0xb0] sm:$0xff]  }
 0x2e4   :  { %v723_v9 = vrot.slane %v721_v5, 7  ;;  %v710_v11 = vadd.f32 %v1276_v53, %v698_v7  ;;  %v714_v14 = vmax.f32 %v709_v6, 0.0  ;;  %v1710_v5 = vld [vmem:[%s2157_s5 + $0x98] sm:$0xff]   ;;  %v1711_v6 = vld [vmem:[%s2157_s5 + $0xa0] sm:$0xff]   ;;  %v1712_v7 = vld [vmem:[%s2157_s5 + $0xa8] sm:$0xff]  }
 0x2e6   :  { %v726_v12 = vor.u32 %v724_v10, %v723_v9  ;;  %v715_v15 = vmax.f32 %v710_v11, 0.0  ;;  %v747_v27 = vsel %vm1817_vm5, %v723_v9, 0  ;;  %v1714_v9 = vld [vmem:[%s2157_s5 + $0xb8] sm:$0xff]   ;;  %v1333_v10 = vld [vmem:[%s2160_s8] ss:$0 sm:$0xff] }
 0x2e7   :  { %v677_v16 = vpop.f32.mrb[20].mxu0  ;;  %v749_v33 = vsel %vm245_vm3, %v747_v27, 0 }
 0x2e8   :  { %v2024_v17 = vsel %vm1817_vm5, 0, %v726_v12  ;;  %v718_v18 = vpack.c.bf16 %v715_v15, %v714_v14  ;;  %v699_v19 = vmul.f32 %v1275_v51, %v677_v16  ;;  %v1522_v20 = vpop.f32.mrb[21].mxu0  ;;  %v1334_v12 = vld [vmem:[%s2161_s9] ss:$0 sm:$0xff] }
 0x2e9   :  { %v680_v21 = vpop.f32.mrb[22].mxu0  ;;  %v789_v26 = vshll.u32 %v2024_v17, 16  ;;  %v787_v37 = vshrl.u32 %v2024_v17, 16  ;;  %v1040_v39 = vrot.slane %v2024_v17, 1 }
 0x2ea   :  { %v730_v23 = vshrl.u32 %v718_v18, 16  ;;  %v711_v24 = vadd.f32 %v1276_v53, %v699_v19  ;;  %v1523_v25 = vpop.f32.mrb[23].mxu0  ;;  %v733_v29 = vshll.u32 %v718_v18, 16 }
 0x2eb   :  { %v791_v34 = vrot.slane %v789_v26, 1 }
 0x2ec   :  { %v732_v28 = vrot.slane %v730_v23, 7  ;;  %v716_v30 = vmax.f32 %v711_v24, 0.0 }
 0x2ed   :  { %v792_v42 = vor.u32 %v791_v34, %v787_v37 }
 0x2ee   :  { %v735_v31 = vor.u32 %v733_v29, %v732_v28  ;;  %v719_v32 = vpack.c.bf16 %v716_v30, %v716_v30 }
 0x2f0   :  { %v751_v35 = vsel %vm1829_vm7, %v749_v33, %v735_v31  ;;  %v737_v36 = vshrl.u32 %v719_v32, 16  ;;  %v740_v41 = vshll.u32 %v719_v32, 16 }
 0x2f1   :  { %v794_v38 = vshll.u32 %v751_v35, 16  ;;  %v1041_v40 = vrot.slane %v751_v35, 1  ;;  %v798_v51 = vshrl.u32 %v751_v35, 16 }
 0x2f2   :  { %v739_v13 = vrot.slane %v737_v36, 7 }
 0x2f3   :  { %v796_v43 = vrot.slane %v794_v38, 1  ;;  %v2038_v45 = vsel %vm570_vm10, %v1040_v39, %v1041_v40 }
 0x2f4   :  { %v742_v46 = vor.u32 %v740_v41, %v739_v13 }
 0x2f5   :  { %v797_v47 = vsel %vm318_vm11, %v792_v42, %v796_v43  ;;  %v800_v54 = vor.u32 %v798_v51, %v796_v43 }
 0x2f6   :  { %1541 = vmatmul.mubr.bf16.vlgmr.msra.gmra.mrb[12].mxu1 %v797_v47  ;;  %v743_v48 = vsel %vm246_vm2, %v732_v28, %v742_v46 }
 0x2f7   :  { %1553 = vmatpush3.bf16.msra.mxu1 %v1699_v44  ;;  %1544 = vmatprep.mubr.msk.bf16.mxu1 %vm1716_vm0, %v1715_v0  ;;  %v2049_v50 = vsel %vm1829_vm7, %v743_v48, 0 }
 0x2f8   :  { %1554 = vmatprep.subr.bf16.mxu1 %v1715_v0  ;;  %v802_v52 = vshll.u32 %v2049_v50, 16  ;;  %v1043_v53 = vrot.slane %v2049_v50, 1  ;;  %v806_v59 = vshrl.u32 %v2049_v50, 16 }
 0x2fa   :  { %v804_v55 = vrot.slane %v802_v52, 1  ;;  %v1044_v56 = vsel %vm570_vm10, %v1041_v40, %v1043_v53 }
 0x2fb   :  { %1555 = vmatpush3.bf16.msra.mxu1 %v1700_v49 }
 0x2fc   :  { %1556 = vmatprep.subr.bf16.mxu1 %v1715_v0  ;;  %v805_v57 = vsel %vm318_vm11, %v800_v54, %v804_v55  ;;  %v808_v61 = vor.u32 %v806_v59, %v804_v55 }
 0x2fe   :  { %1545 = vmatmul.mubr.bf16.gmra.mrb[16].mxu1 %v805_v57 }
 0x2ff   :  { %1557 = vmatpush3.bf16.msra.mxu1 %v1701_v22  ;;  %1548 = vmatprep.mubr.msk.bf16.mxu1 %vm1716_vm0, %v1715_v0 }
 0x300   :  { %1558 = vmatprep.subr.bf16.mxu1 %v1715_v0 }
 0x303   :  { %1559 = vmatpush3.bf16.msra.mxu1 %v1702_v58 }
 0x304   :  { %1560 = vmatprep.subr.bf16.mxu1 %v1715_v0 }
 0x306   :  { %1549 = vmatmul.mubr.bf16.gmra.mrb[20].mxu1 %v808_v61 }
 0x307   :  { %1561 = vmatpush3.bf16.msra.mxu1 %v1703_v60  ;;  %1568 = vmatprep.mubr.msk.bf16.mxu1 %vm1716_vm0, %v1715_v0 }
 0x308   :  { %1562 = vmatprep.subr.bf16.mxu1 %v1715_v0 }
 0x30b   :  { %1563 = vmatpush3.bf16.msra.mxu1 %v1704_v62 }
 0x30c   :  { %1564 = vmatprep.subr.bf16.mxu1 %v1715_v0 }
 0x30f   :  { %1565 = vmatpush3.bf16.msra.mxu1 %v1705_v63 }
 0x310   :  { %1566 = vmatprep.subr.bf16.mxu1 %v1715_v0 }
 0x313   :  { %1567 = vmatpush3.bf16.msra.mxu1 %v1706_v1 }
 0x314   :  { %1580 = vmatprep.subr.bf16.mxu1 %v1715_v0 }
 0x316   :  { %1569 = vmatmul.mubr.bf16.vlgmr.msra.gmra.mrb[12].mxu1 %v2024_v17 }
 0x317   :  { %1581 = vmatpush3.bf16.msra.mxu1 %v1707_v2  ;;  %1572 = vmatprep.mubr.msk.bf16.mxu1 %vm1716_vm0, %v1715_v0 }
 0x318   :  { %1582 = vmatprep.subr.bf16.mxu1 %v1715_v0 }
 0x31b   :  { %1583 = vmatpush3.bf16.msra.mxu1 %v1708_v3 }
 0x31c   :  { %1584 = vmatprep.subr.bf16.mxu1 %v1715_v0 }
 0x31e   :  { %1573 = vmatmul.mubr.bf16.gmra.mrb[16].mxu1 %v751_v35 }
 0x31f   :  { %1585 = vmatpush3.bf16.msra.mxu1 %v1709_v4  ;;  %1576 = vmatprep.mubr.msk.bf16.mxu1 %vm1716_vm0, %v1715_v0 }
 0x320   :  { %1586 = vmatprep.subr.bf16.mxu1 %v1715_v0 }
 0x323   :  { %1587 = vmatpush3.bf16.msra.mxu1 %v1710_v5 }
 0x324   :  { %1588 = vmatprep.subr.bf16.mxu1 %v1715_v0 }
 0x326   :  { %1577 = vmatmul.mubr.bf16.gmra.mrb[20].mxu1 %v2049_v50 }
 0x327   :  { %1589 = vmatpush3.bf16.msra.mxu1 %v1711_v6  ;;  %1596 = vmatprep.mubr.msk.bf16.mxu1 %vm1716_vm0, %v1715_v0 }
 0x328   :  { %1590 = vmatprep.subr.bf16.mxu1 %v1715_v0 }
 0x32b   :  { %1591 = vmatpush3.bf16.msra.mxu1 %v1712_v7 }
 0x32c   :  { %1592 = vmatprep.subr.bf16.mxu1 %v1715_v0 }
 0x32f   :  { %1593 = vmatpush3.bf16.msra.mxu1 %v1713_v8 }
 0x330   :  { %1594 = vmatprep.subr.bf16.mxu1 %v1715_v0 }
 0x333   :  { %1595 = vmatpush3.bf16.msra.mxu1 %v1714_v9 }
 0x336   :  { %1597 = vmatmul.mubr.bf16.vlgmr.msra.gmra.mrb[12].mxu1 %v2038_v45 }
 0x337   :  { %1600 = vmatprep.mubr.msk.bf16.mxu1 %vm1716_vm0, %v1715_v0 }
 0x33e   :  { %1601 = vmatmul.mubr.bf16.gmra.mrb[16].mxu1 %v1044_v56 }
 0x33f   :  { %1604 = vmatprep.mubr.msk.bf16.mxu1 %vm1716_vm0, %v1715_v0 }
 0x346   :  { %1605 = vmatmul.mubr.bf16.gmra.mrb[20].mxu1 %v1043_v53 }
 0x409   :  { %v1130_v11 = vpop.f32.mrb[12].mxu1 }
 0x40a   :  { %v1164_v14 = vmul.f32 %v1333_v10, %v1130_v11  ;;  %v1598_v15 = vpop.f32.mrb[13].mxu1 }
 0x40b   :  { %v1133_v16 = vpop.f32.mrb[14].mxu1 }
 0x40c   :  { %v1176_v17 = vadd.f32 %v1334_v12, %v1164_v14  ;;  %v1165_v18 = vmul.f32 %v1333_v10, %v1133_v16  ;;  %v1599_v19 = vpop.f32.mrb[15].mxu1 }
 0x40e   :  { %v1181_v20 = vmax.f32 %v1176_v17, 0.0  ;;  %v1177_v0 = vadd.f32 %v1334_v12, %v1165_v18 }
 0x410   :  { %1197 = vst [vmem:[%s2162_s10] sm:$0xff] %v1181_v20  ;;  %v1182_v21 = vmax.f32 %v1177_v0, 0.0 }
 0x411   :  { %v1138_v23 = vpop.f32.mrb[16].mxu1 }
 0x412   :  { %1198 = vst [vmem:[%s2162_s10 + $0x8] sm:$0xff] %v1182_v21  ;;  %v1166_v24 = vmul.f32 %v1333_v10, %v1138_v23  ;;  %v1602_v25 = vpop.f32.mrb[17].mxu1 }
 0x413   :  { %v1141_v26 = vpop.f32.mrb[18].mxu1 }
 0x414   :  { %v1178_v27 = vadd.f32 %v1334_v12, %v1166_v24  ;;  %v1167_v28 = vmul.f32 %v1333_v10, %v1141_v26  ;;  %v1603_v29 = vpop.f32.mrb[19].mxu1 }
 0x416   :  { %v1183_v30 = vmax.f32 %v1178_v27, 0.0  ;;  %v1179_v31 = vadd.f32 %v1334_v12, %v1167_v28 }
 0x418   :  { %v1184_v32 = vmax.f32 %v1179_v31, 0.0  ;;  %v1190_v34 = vrot.slane %v1183_v30, 2 }
 0x419   :  { %v1146_v33 = vpop.f32.mrb[20].mxu1 }
 0x41a   :  { %v1191_v35 = vrot.slane %v1184_v32, 2  ;;  %v1168_v36 = vmul.f32 %v1333_v10, %v1146_v33  ;;  %v1606_v37 = vpop.f32.mrb[21].mxu1 }
 0x41b   :  { %v1149_v38 = vpop.f32.mrb[22].mxu1 }
 0x41c   :  { %v1192_v39 = vsel %vm1189_vm12, %v1190_v34, %v1191_v35  ;;  %v1180_v40 = vadd.f32 %v1334_v12, %v1168_v36  ;;  %v1607_v13 = vpop.f32.mrb[23].mxu1 }
 0x41d   :  { %1199 = vst [vmem:[%s2162_s10 + $0x10] sm:$0xff] %v1192_v39 }
 0x41e   :  { %v1185_v41 = vmax.f32 %v1180_v40, 0.0 }
 0x420   :  { %v1193_v42 = vrot.slane %v1185_v41, 2 }
 0x422   :  { %v1194_v43 = vsel %vm1189_vm12, %v1191_v35, %v1193_v42 }
 0x423   :  { %1200 = vst [vmem:[%s2162_s10 + $0x18] sm:$0xff] %v1194_v43 }

</bundles_post_ra>
